<compile_context>
chip_gen: v7x
topology: tpu7x:2x2x1
jax: 0.10.0
libtpu: 0.0.40
codegen_flags: <defaults>
</compile_context>

<pallas_src>
import functools

import jax
import jax.numpy as jnp
from jax.experimental import pallas as pl
from jax.experimental.pallas import tpu as pltpu


# --------------------------------------------------------------------------- #
# Small helpers
# --------------------------------------------------------------------------- #
def _cdiv(a, b):
    return -(-a // b)


def _round_up(n, m):
    return _cdiv(n, m) * m


@functools.lru_cache(maxsize=None)
def _vmem_capacity_bytes():
    """Physical VMEM per TensorCore; conservative 64 MiB fallback (v7x)."""
    try:
        cap = int(pltpu.get_tpu_info().vmem_capacity_bytes)
        if cap > 0:
            return cap
    except Exception:
        pass
    return 64 * 1024 * 1024


def _vmem_footprint_bytes(tm, tk, K_pad, H_pad, C_pad, itemsize, resident):
    """Working-set estimate; constant operands counted double-buffered (2x)."""
    w1_block = (K_pad if resident else tk) * H_pad
    fp = 2 * tm * tk * itemsize            # x tile (double-buffered)
    fp += 2 * w1_block * itemsize          # W1 (resident block or K slab)
    fp += 2 * (H_pad + C_pad) * 4          # biases (f32)
    fp += 2 * H_pad * C_pad * itemsize     # W2 (resident)
    fp += 2 * tm * C_pad * 4               # output tile (f32)
    if not resident:
        fp += tm * H_pad * 4               # fc1 f32 accumulator scratch
    return fp


# --------------------------------------------------------------------------- #
# Tiling plan + one-time weight preparation (hoisted out of the call path)
# --------------------------------------------------------------------------- #
def _weight_plan(d_in, hidden, n_classes, compute_dtype, block_k,
                 force_k_tiling):
    itemsize = jnp.dtype(compute_dtype).itemsize
    C_pad = _round_up(max(n_classes, 128), 128)     # lane-dense output (102->128)
    H_pad = _round_up(max(hidden, 128), 128)
    K0 = _round_up(max(d_in, 128), 128)             # pad K to 128-granularity only

    vmem_cap = _vmem_capacity_bytes()
    budget = int(vmem_cap * 0.75)                   # headroom for internal scratch

    # Keep W1 fully VMEM-resident (fetched once, no k axis) when it fits
    # comfortably together with W2; otherwise stream (tk, H_pad) slabs.
    resident_bytes = 2 * (K0 + C_pad) * H_pad * itemsize
    resident = (not force_k_tiling) and resident_bytes <= budget // 2

    if resident:
        tk, n_k, K_pad = K0, 1, K0
    else:
        tk = max(128, (min(block_k, K0) // 128) * 128)
        while tk > 128 and 2 * tk * H_pad * itemsize > budget // 3:
            tk = max(128, ((tk // 2) // 128) * 128)
        n_k = _cdiv(K0, tk)
        tk = _round_up(_cdiv(K0, n_k), 128)         # even tiles, minimal padding
        K_pad = tk * n_k

    return dict(d_in=d_in, hidden=hidden, n_classes=n_classes,
                compute_dtype=jnp.dtype(compute_dtype), itemsize=itemsize,
                C_pad=C_pad, H_pad=H_pad, K_pad=K_pad, tk=tk, n_k=n_k,
                resident=resident, vmem_cap=vmem_cap, budget=budget)


def prepare_params(w1_t, b1, w2_t, b2, *, compute_dtype=jnp.bfloat16,
                   block_k=1024, force_k_tiling=False):
    """Pad/cast the weights ONCE (not per forward call).

    w1_t: (D_in, H), b1: (1, H) or (H,), w2_t: (H, C), b2: (1, C) or (C,).
    Weights are stored as (in_features, out_features) — the transpose of
    torch's Linear.weight — so the kernel computes plain `x @ W`.
    """
    d_in, hidden = w1_t.shape
    n_classes = w2_t.shape[1]
    plan = _weight_plan(d_in, hidden, n_classes, compute_dtype, block_k,
                        force_k_tiling)
    cdt = plan["compute_dtype"]
    f32 = jnp.float32
    K_pad, H_pad, C_pad = plan["K_pad"], plan["H_pad"], plan["C_pad"]

    b1 = jnp.reshape(b1, (1, hidden)).astype(f32)
    b2 = jnp.reshape(b2, (1, n_classes)).astype(f32)

    # Zero padding of K / H is exact (contributes 0 to both matmuls).
    w1p = jnp.zeros((K_pad, H_pad), cdt).at[:d_in, :hidden].set(
        w1_t.astype(cdt))
    b1p = jnp.zeros((1, H_pad), f32).at[:, :hidden].set(b1)
    w2p = jnp.zeros((H_pad, C_pad), cdt).at[:hidden, :n_classes].set(
        w2_t.astype(cdt))
    # Class-padding mask folded into the bias: padded lanes get -1e30 so the
    # log-softmax normalizer ignores them (their W2 columns are zero).
    b2p = jnp.full((1, C_pad), -1e30, f32).at[:, :n_classes].set(b2)

    return dict(plan=plan, w1p=w1p, b1p=b1p, w2p=w2p, b2p=b2p)


# --------------------------------------------------------------------------- #
# Kernels
# --------------------------------------------------------------------------- #
def _log_softmax_f32(logits):
    m = jnp.max(logits, axis=-1, keepdims=True)
    shifted = logits - m
    lse = jnp.log(jnp.sum(jnp.exp(shifted), axis=-1, keepdims=True))
    return shifted - lse


def _ff_kernel_resident(x_ref, w1_ref, b1_ref, w2_ref, b2_ref, o_ref):
    """W1 fully resident: one fused fc1+ReLU+fc2+log-softmax per batch tile."""
    h = jnp.dot(x_ref[...], w1_ref[...], preferred_element_type=jnp.float32)
    h = jnp.maximum(h + b1_ref[...], 0.0)
    logits = jnp.dot(h.astype(w2_ref.dtype), w2_ref[...],
                     preferred_element_type=jnp.float32) + b2_ref[...]
    o_ref[...] = _log_softmax_f32(logits).astype(o_ref.dtype)


def _ff_kernel_ktiled(x_ref, w1_ref, b1_ref, w2_ref, b2_ref, o_ref, acc_ref):
    """Grid = (batch tiles i, fc1 K tiles k); k trailing / arbitrary; the
    output block and f32 accumulator stay resident across k."""
    k = pl.program_id(1)

    @pl.when(k == 0)
    def _():
        acc_ref[...] = jnp.zeros_like(acc_ref)

    acc_ref[...] += jnp.dot(x_ref[...], w1_ref[...],
                            preferred_element_type=jnp.float32)

    @pl.when(k == pl.num_programs(1) - 1)
    def _():
        h = jnp.maximum(acc_ref[...] + b1_ref[...], 0.0)
        logits = jnp.dot(h.astype(w2_ref.dtype), w2_ref[...],
                         preferred_element_type=jnp.float32) + b2_ref[...]
        o_ref[...] = _log_softmax_f32(logits).astype(o_ref.dtype)


# --------------------------------------------------------------------------- #
# Forward pass
# --------------------------------------------------------------------------- #
def feedforward(x, prepared, *, block_b=512):
    """x: (B, D_in) f32; prepared: output of prepare_params().
    Returns (B, n_classes) f32 log-probabilities."""
    plan = prepared["plan"]
    cdt = plan["compute_dtype"]
    itemsize, resident = plan["itemsize"], plan["resident"]
    K_pad, H_pad, C_pad = plan["K_pad"], plan["H_pad"], plan["C_pad"]
    tk, n_k = plan["tk"], plan["n_k"]
    d_in, n_classes = plan["d_in"], plan["n_classes"]

    B = x.shape[0]
    assert x.shape[1] == d_in, "input feature size mismatch with prepared params"

    # Batch tiling: pad only to sublane (8) granularity, then pick a tile that
    # evenly divides the padded batch (padding is not tied to the tile size).
    B8 = _round_up(B, 8)
    tm = min(_round_up(block_b, 8), B8)
    if B8 >= 16:
        # Guarantee >= 2 batch tiles so the "parallel" axis spans both v7x TCs.
        tm = min(tm, _round_up(_cdiv(B8, 2), 8))
    while tm > 8 and _vmem_footprint_bytes(
            tm, tk, K_pad, H_pad, C_pad, itemsize, resident) > plan["budget"]:
        tm = max(8, _round_up(tm // 2, 8))
    n_b = _cdiv(B8, tm)
    tm = _round_up(_cdiv(B8, n_b), 8)
    B_pad = tm * n_b

    # Per-call input prep: pad + cast x only (weights were prepared once).
    xp = jnp.zeros((B_pad, K_pad), cdt).at[:B, :d_in].set(x.astype(cdt))
    w1p, b1p, w2p, b2p = (prepared["w1p"], prepared["b1p"],
                          prepared["w2p"], prepared["b2p"])

    footprint = _vmem_footprint_bytes(tm, tk, K_pad, H_pad, C_pad, itemsize,
                                      resident)
    vmem_limit = int(min(max(int(footprint * 1.5) + (4 << 20), 16 << 20),
                         plan["vmem_cap"] - (2 << 20)))

    flops = 2 * B_pad * (K_pad * H_pad + H_pad * C_pad)
    w1_passes = 1 if resident else n_b           # W1 re-streamed per batch tile
    bytes_accessed = (B_pad * K_pad * itemsize
                      + K_pad * H_pad * itemsize * w1_passes
                      + H_pad * C_pad * itemsize
                      + (H_pad + C_pad) * 4
                      + B_pad * C_pad * 4)
    cost = pl.CostEstimate(flops=int(flops),
                           transcendentals=int(B_pad * (C_pad + 1)),
                           bytes_accessed=int(bytes_accessed))

    if resident:
        kernel = _ff_kernel_resident
        grid = (n_b,)
        in_specs = [
            pl.BlockSpec((tm, K_pad), lambda i: (i, 0)),         # x tile
            pl.BlockSpec((K_pad, H_pad), lambda i: (0, 0)),      # W1 resident
            pl.BlockSpec((1, H_pad), lambda i: (0, 0)),          # b1 resident
            pl.BlockSpec((H_pad, C_pad), lambda i: (0, 0)),      # W2 resident
            pl.BlockSpec((1, C_pad), lambda i: (0, 0)),          # b2 resident
        ]
        out_specs = pl.BlockSpec((tm, C_pad), lambda i: (i, 0))
        scratch_shapes = []
        dim_sem = ("parallel",)
    else:
        kernel = _ff_kernel_ktiled
        grid = (n_b, n_k)
        in_specs = [
            pl.BlockSpec((tm, tk), lambda i, k: (i, k)),          # x tile
            pl.BlockSpec((tk, H_pad), lambda i, k: (k, 0)),       # W1 K-slab
            pl.BlockSpec((1, H_pad), lambda i, k: (0, 0)),        # b1 resident
            pl.BlockSpec((H_pad, C_pad), lambda i, k: (0, 0)),    # W2 resident
            pl.BlockSpec((1, C_pad), lambda i, k: (0, 0)),        # b2 resident
        ]
        out_specs = pl.BlockSpec((tm, C_pad), lambda i, k: (i, 0))
        scratch_shapes = [pltpu.VMEM((tm, H_pad), jnp.float32)]   # fc1 acc
        dim_sem = ("parallel", "arbitrary")

    out_padded = pl.pallas_call(
        kernel,
        out_shape=jax.ShapeDtypeStruct((B_pad, C_pad), jnp.float32),
        grid_spec=pltpu.PrefetchScalarGridSpec(
            num_scalar_prefetch=0,
            grid=grid,
            in_specs=in_specs,
            out_specs=out_specs,
            scratch_shapes=scratch_shapes,
        ),
        compiler_params=pltpu.CompilerParams(
            dimension_semantics=dim_sem,
            vmem_limit_bytes=vmem_limit),
        cost_estimate=cost,
    )(xp, w1p, b1p, w2p, b2p)

    return out_padded[:B, :n_classes]


# --------------------------------------------------------------------------- #
# Reference + init (torch.nn.Linear-style) for validation
# --------------------------------------------------------------------------- #
def init_params(key, input_size, hidden_size, n_classes=102):
    """U(-1/sqrt(fan_in), 1/sqrt(fan_in)), weights stored as (in, out)."""
    k1, k2, k3, k4 = jax.random.split(key, 4)
    bound1 = 1.0 / jnp.sqrt(input_size)
    bound2 = 1.0 / jnp.sqrt(hidden_size)
    w1_t = jax.random.uniform(k1, (input_size, hidden_size), jnp.float32,
                              minval=-bound1, maxval=bound1)
    b1 = jax.random.uniform(k2, (1, hidden_size), jnp.float32,
                            minval=-bound1, maxval=bound1)
    w2_t = jax.random.uniform(k3, (hidden_size, n_classes), jnp.float32,
                              minval=-bound2, maxval=bound2)
    b2 = jax.random.uniform(k4, (1, n_classes), jnp.float32,
                            minval=-bound2, maxval=bound2)
    return w1_t, b1, w2_t, b2


def feedforward_ref(x, w1_t, b1, w2_t, b2):
    h = jnp.maximum(x @ w1_t + b1, 0.0)
    logits = h @ w2_t + b2
    return jax.nn.log_softmax(logits, axis=-1)


if __name__ == "__main__":
    key = jax.random.PRNGKey(0)
    kx1, kp1, kx2, kp2 = jax.random.split(key, 4)
    n_classes = 102

    # ---- Test 1: small shapes — W1-resident fused path (f32 tight, bf16 loose)
    batch, input_size, hidden_size = 8, 32, 64
    x = jax.random.normal(kx1, (batch, input_size), jnp.float32)
    w1_t, b1, w2_t, b2 = init_params(kp1, input_size, hidden_size, n_classes)
    ref = feedforward_ref(x, w1_t, b1, w2_t, b2)

    prep_f32 = prepare_params(w1_t, b1, w2_t, b2, compute_dtype=jnp.float32)
    out_f32 = jax.block_until_ready(feedforward(x, prep_f32))
    assert out_f32.shape == (batch, n_classes)
    assert jnp.allclose(out_f32, ref, atol=1e-4, rtol=1e-4), "f32 mismatch"

    prep_bf16 = prepare_params(w1_t, b1, w2_t, b2, compute_dtype=jnp.bfloat16)
    out_bf16 = jax.block_until_ready(feedforward(x, prep_bf16))
    assert out_bf16.shape == (batch, n_classes)
    assert jnp.allclose(out_bf16, ref, atol=1e-1, rtol=0.0), "bf16 mismatch"

    # ---- Test 2: forced K-tiled reduction path with ragged (padded) B and K.
    batch2, input2, hidden2 = 20, 300, 200
    x2 = jax.random.normal(kx2, (batch2, input2), jnp.float32)
    params2 = init_params(kp2, input2, hidden2, n_classes)
    ref2 = feedforward_ref(x2, *params2)
    prep2 = prepare_params(*params2, compute_dtype=jnp.float32,
                           block_k=128, force_k_tiling=True)
    out2 = jax.block_until_ready(feedforward(x2, prep2, block_b=256))
    assert out2.shape == (batch2, n_classes)
    assert jnp.allclose(out2, ref2, atol=1e-4, rtol=1e-4), "k-tiled mismatch"

    print("KERNEL_OK")
</pallas_src>

<mosaic_0001>
module attributes {stable_mosaic.version = 11 : i64} {
  func.func @_ff_kernel_resident(%arg0: i32, %arg1: memref<8x128xf32, #tpu.memory_space<vmem>>, %arg2: memref<128x128xf32, #tpu.memory_space<vmem>>, %arg3: memref<1x128xf32, #tpu.memory_space<vmem>>, %arg4: memref<128x128xf32, #tpu.memory_space<vmem>>, %arg5: memref<1x128xf32, #tpu.memory_space<vmem>>, %arg6: memref<8x128xf32, #tpu.memory_space<vmem>>) attributes {dimension_semantics = [#tpu.dimension_semantics<parallel>], iteration_bounds = array<i64: 1>, scalar_prefetch = 0 : i64, scratch_operands = 0 : i64, tpu.core_type = #tpu.core_type<tc>, window_params = [{transform_indices = @transform_0, window_bounds = array<i64: 8, 128>}, {pipeline_mode = #tpu.pipeline_mode<synchronous>, transform_indices = @transform_1, window_bounds = array<i64: 128, 128>}, {pipeline_mode = #tpu.pipeline_mode<synchronous>, transform_indices = @transform_2, window_bounds = array<i64: 1, 128>}, {pipeline_mode = #tpu.pipeline_mode<synchronous>, transform_indices = @transform_3, window_bounds = array<i64: 128, 128>}, {pipeline_mode = #tpu.pipeline_mode<synchronous>, transform_indices = @transform_4, window_bounds = array<i64: 1, 128>}, {transform_indices = @transform_5, window_bounds = array<i64: 8, 128>}]} {
    %c0 = arith.constant 0 : index
    %c0_0 = arith.constant 0 : index
    %0 = vector.load %arg1[%c0, %c0_0] : memref<8x128xf32, #tpu.memory_space<vmem>>, vector<8x128xf32>
    %c0_1 = arith.constant 0 : index
    %c0_2 = arith.constant 0 : index
    %1 = vector.load %arg2[%c0_1, %c0_2] : memref<128x128xf32, #tpu.memory_space<vmem>>, vector<128x128xf32>
    %cst = arith.constant dense<0.000000e+00> : vector<8x128xf32>
    %2 = tpu.matmul %0, %1, %cst {dimension_numbers = #tpu.dot_dimension_numbers<[1], [0], [0], [1], [0, 0, 1, 1], [], []>} : vector<8x128xf32>, vector<128x128xf32>, vector<8x128xf32> -> vector<8x128xf32>
    %c0_3 = arith.constant 0 : index
    %c0_4 = arith.constant 0 : index
    %3 = vector.load %arg3[%c0_3, %c0_4] : memref<1x128xf32, #tpu.memory_space<vmem>>, vector<1x128xf32>
    %4 = vector.broadcast %3 : vector<1x128xf32> to vector<8x128xf32>
    %5 = arith.addf %2, %4 : vector<8x128xf32>
    %cst_5 = arith.constant 0.000000e+00 : f32
    %6 = vector.broadcast %cst_5 : f32 to vector<8x128xf32>
    %7 = arith.maximumf %5, %6 : vector<8x128xf32>
    %c0_6 = arith.constant 0 : index
    %c0_7 = arith.constant 0 : index
    %8 = vector.load %arg4[%c0_6, %c0_7] : memref<128x128xf32, #tpu.memory_space<vmem>>, vector<128x128xf32>
    %cst_8 = arith.constant dense<0.000000e+00> : vector<8x128xf32>
    %9 = tpu.matmul %7, %8, %cst_8 {dimension_numbers = #tpu.dot_dimension_numbers<[1], [0], [0], [1], [0, 0, 1, 1], [], []>} : vector<8x128xf32>, vector<128x128xf32>, vector<8x128xf32> -> vector<8x128xf32>
    %c0_9 = arith.constant 0 : index
    %c0_10 = arith.constant 0 : index
    %10 = vector.load %arg5[%c0_9, %c0_10] : memref<1x128xf32, #tpu.memory_space<vmem>>, vector<1x128xf32>
    %11 = vector.broadcast %10 : vector<1x128xf32> to vector<8x128xf32>
    %12 = arith.addf %9, %11 : vector<8x128xf32>
    %cst_11 = arith.constant dense<0xFF800000> : vector<8xf32>
    %13 = vector.multi_reduction <maximumf>, %12, %cst_11 [1] : vector<8x128xf32> to vector<8xf32>
    %14 = vector.shape_cast %13 : vector<8xf32> to vector<8x1xf32>
    %15 = vector.broadcast %14 : vector<8x1xf32> to vector<8x128xf32>
    %16 = arith.subf %12, %15 : vector<8x128xf32>
    %17 = math.exp %16 : vector<8x128xf32>
    %cst_12 = arith.constant dense<0.000000e+00> : vector<8xf32>
    %18 = vector.multi_reduction <add>, %17, %cst_12 [1] : vector<8x128xf32> to vector<8xf32>
    %19 = vector.shape_cast %18 : vector<8xf32> to vector<8x1xf32>
    %20 = math.log %19 : vector<8x1xf32>
    %21 = vector.broadcast %20 : vector<8x1xf32> to vector<8x128xf32>
    %22 = arith.subf %16, %21 : vector<8x128xf32>
    %c0_13 = arith.constant 0 : index
    %c0_14 = arith.constant 0 : index
    %23 = vector.load %arg6[%c0_13, %c0_14] : memref<8x128xf32, #tpu.memory_space<vmem>>, vector<8x128xf32>
    tpu.vector_store %arg6[%c0_13, %c0_14], %22 {strides = array<i32>} : memref<8x128xf32, #tpu.memory_space<vmem>>, vector<8x128xf32>,
    return
  }
  func.func @transform_0(%arg0: i32) -> (i32, i32) {
    %c0_i32 = arith.constant 0 : i32
    %c0_i32_0 = arith.constant 0 : i32
    return %arg0, %c0_i32 : i32, i32
  }
  func.func @transform_1(%arg0: i32) -> (i32, i32) {
    %c0_i32 = arith.constant 0 : i32
    %c0_i32_0 = arith.constant 0 : i32
    %c0_i32_1 = arith.constant 0 : i32
    return %c0_i32, %c0_i32_0 : i32, i32
  }
  func.func @transform_2(%arg0: i32) -> (i32, i32) {
    %c0_i32 = arith.constant 0 : i32
    %c0_i32_0 = arith.constant 0 : i32
    %c0_i32_1 = arith.constant 0 : i32
    return %c0_i32, %c0_i32_0 : i32, i32
  }
  func.func @transform_3(%arg0: i32) -> (i32, i32) {
    %c0_i32 = arith.constant 0 : i32
    %c0_i32_0 = arith.constant 0 : i32
    %c0_i32_1 = arith.constant 0 : i32
    return %c0_i32, %c0_i32_0 : i32, i32
  }
  func.func @transform_4(%arg0: i32) -> (i32, i32) {
    %c0_i32 = arith.constant 0 : i32
    %c0_i32_0 = arith.constant 0 : i32
    %c0_i32_1 = arith.constant 0 : i32
    return %c0_i32, %c0_i32_0 : i32, i32
  }
  func.func @transform_5(%arg0: i32) -> (i32, i32) {
    %c0_i32 = arith.constant 0 : i32
    %c0_i32_0 = arith.constant 0 : i32
    return %arg0, %c0_i32 : i32, i32
  }
}

</mosaic_0001>

<bundles_post_ra>
// kernel: tpu_custom_call.1
= control target key start
LH: loop header
LB: loop body
LE: loop exit
PB: predicated region body
PF: predicated region fallthrough
CT: control target
= control target key end

     0   :  { %10 = vsyncpa [#allocation3], 0  ;;  %s651_s0 = inlined_call_operand.hbm [shape: f32[8,128], index: 0, kind: input, shape index: {}]   ;;  %s652_s1 = inlined_call_operand.hbm [shape: f32[128,128], index: 1, kind: input, shape index: {}]   ;;  %s653_s2 = inlined_call_operand.vmem [shape: f32[1,128], index: 2, kind: input, shape index: {}]   ;;  %s654_s3 = inlined_call_operand.hbm [shape: f32[128,128], index: 3, kind: input, shape index: {}]   ;;  %s655_s4 = inlined_call_operand.vmem [shape: f32[1,128], index: 4, kind: input, shape index: {}]   ;;  %s656_s5 = inlined_call_operand.hbm [shape: f32[8,128], index: 5, kind: output, shape index: {}]  }
   0x1   :  { %11 = vsyncpa [#allocation6], 0 }
   0x2   :  { %12 = vsyncpa [#allocation4], 0  ;;  %s536_s18 = smov [#allocation5]   ;;  %s442_s22 = scalar_lea.hbm %s652_s1, 2048 }
   0x3   :  { %s28_s19 = sshll.u32 %s536_s18, 4  ;;  %p443_p0 = scmp.ne.s32.totalorder %s652_s1, %s442_s22  ;;  %s29_s19 = int_to_ptr.vmem [resolvable:$true] %s28_s19 }
   0x4   :  { %p446_p1 = scmp.lt.u32.totalorder %s442_s22, %s652_s1 }
   0x6   :  { %p448_p2 = pnand %p446_p1, %p443_p0 }
   0x8   :  { %451 = shalt.err (!%p448_p2)
}
   0x9   :  { %s452_s27 = scalar_lea.vmem %s29_s19, 2048  ;;  %p457_p4 = scmp.lt.s32.totalorder %s29_s19, %s29_s19 }
   0xa   :  { %p453_p3 = scmp.ne.s32.totalorder %s29_s19, %s452_s27  ;;  %p458_p5 = scmp.lt.s32.totalorder %s452_s27, %s452_s27 }
   0xc   :  { %p459_p6 = por %p458_p5, %p457_p4 }
   0xe   :  { %p460_p7 = pnand %p459_p6, %p453_p3 }
  0x10   :  { %463 = shalt.err (!%p460_p7)
}
  0x11   :  { %s537_s28 = smov 128   ;;  %s538_s29 = smov 8  }
  0x12   :  { %34 = dma.hbm_to_vmem [thread:$0]  %s652_s1, 2048, %s29_s19, [#allocation6], %s537_s28, %s537_s28, %s538_s29  }
  0x13   :  { %s539_s7 = smov [#allocation2]   ;;  %s540_s9 = smov [#allocation7]  }
  0x14   :  { %s19_s8 = sshll.u32 %s539_s7, 4  ;;  %s42_s10 = sshll.u32 %s540_s9, 4  ;;  %s20_s8 = int_to_ptr.vmem [resolvable:$true] %s19_s8  ;;  %s43_s10 = int_to_ptr.vmem [resolvable:$true] %s42_s10 }
  0x15   :  { %s464_s13 = scalar_lea.hbm %s651_s0, 128 }
  0x16   :  { %p465_p8 = scmp.ne.s32.totalorder %s651_s0, %s464_s13  ;;  %p468_p9 = scmp.lt.u32.totalorder %s464_s13, %s651_s0 }
  0x18   :  { %p470_p10 = pnand %p468_p9, %p465_p8 }
  0x1a   :  { %473 = shalt.err (!%p470_p10)
}
  0x1b   :  { %s474_s1 = scalar_lea.vmem %s20_s8, 128  ;;  %p479_p12 = scmp.lt.s32.totalorder %s20_s8, %s20_s8 }
  0x1c   :  { %p475_p11 = scmp.ne.s32.totalorder %s20_s8, %s474_s1  ;;  %p480_p13 = scmp.lt.s32.totalorder %s474_s1, %s474_s1 }
  0x1e   :  { %p481_p0 = por %p480_p13, %p479_p12 }
  0x20   :  { %p482_p1 = pnand %p481_p0, %p475_p11 }
  0x22   :  { %485 = shalt.err (!%p482_p1)
}
  0x23   :  { %22 = dma.hbm_to_vmem [thread:$0]  %s651_s0, 128, %s20_s8, [#allocation3]  }
  0x24   :  { %s486_s22 = scalar_lea.hbm %s654_s3, 2048 }
  0x25   :  { %p487_p2 = scmp.ne.s32.totalorder %s654_s3, %s486_s22  ;;  %p490_p3 = scmp.lt.u32.totalorder %s486_s22, %s654_s3 }
  0x27   :  { %p492_p4 = pnand %p490_p3, %p487_p2 }
  0x29   :  { %495 = shalt.err (!%p492_p4)
}
  0x2a   :  { %s496_s27 = scalar_lea.vmem %s43_s10, 2048  ;;  %p501_p6 = scmp.lt.s32.totalorder %s43_s10, %s43_s10 }
  0x2b   :  { %p497_p5 = scmp.ne.s32.totalorder %s43_s10, %s496_s27  ;;  %p502_p7 = scmp.lt.s32.totalorder %s496_s27, %s496_s27 }
  0x2d   :  { %p503_p8 = por %p502_p7, %p501_p6 }
  0x2f   :  { %p504_p9 = pnand %p503_p8, %p497_p5 }
  0x31   :  { %507 = shalt.err (!%p504_p9)
}
  0x32   :  { %48 = dma.hbm_to_vmem [thread:$0]  %s654_s3, 2048, %s43_s10, [#allocation6], %s537_s28, %s537_s28, %s538_s29  }
  0x33   :  { %530 = dma.done.wait [#allocation3], 128  }
  0x34   :  { %531 = vsyncadd [#allocation3], 4294967168 }
  0x35   :  { %532 = dma.done.wait [#allocation6], 4096  }
  0x36   :  { %533 = vsyncadd [#allocation6], 4294963200  ;;  %v541_v0 = vmov 0.0|0.0   ;;  %vm542_vm0 = vmmov 0   ;;  %v543_v1 = vmov 0.0   ;;  %v61_v2 = vld [vmem:[#allocation5] sm:$0xff] }
  0x37   :  { %381 = vmatprep.subr.bf16.mxu0 %v541_v0  ;;  %343 = vmatprep.mubr.msk.f32.mxu0 %vm542_vm0, %v543_v1  ;;  %v62_v3 = vld [vmem:[#allocation5 + $0x8] sm:$0xff]  ;;  %v63_v4 = vld [vmem:[#allocation5 + $0x10] sm:$0xff]  ;;  %v64_v6 = vld [vmem:[#allocation5 + $0x18] sm:$0xff] }
  0x38   :  { %405 = vmatprep.subr.bf16.mxu1 %v541_v0  ;;  %378 = vmatprep.mubr.msk.f32.mxu1 %vm542_vm0, %v543_v1  ;;  %v382_v5 = vpack.c.bf16 %v62_v3, %v61_v2  ;;  %v385_v7 = vpack.c.bf16 %v64_v6, %v63_v4  ;;  %v65_v8 = vld [vmem:[#allocation5 + $0x20] sm:$0xff]  ;;  %v66_v9 = vld [vmem:[#allocation5 + $0x28] sm:$0xff]  ;;  %v157_v12 = vld [vmem:[#allocation7 + $0x10] sm:$0xff] }
  0x39   :  { %v155_v10 = vld [vmem:[#allocation7] sm:$0xff]  ;;  %v156_v11 = vld [vmem:[#allocation7 + $0x8] sm:$0xff]  ;;  %v158_v13 = vld [vmem:[#allocation7 + $0x18] sm:$0xff]  ;;  %v388_v14 = vpack.c.bf16 %v66_v9, %v65_v8 }
  0x3a   :  { %383 = vmatpush3.bf16.msra.mxu0 %v382_v5  ;;  %v406_v15 = vpack.c.bf16 %v156_v11, %v155_v10  ;;  %v67_v16 = vld [vmem:[#allocation5 + $0x30] sm:$0xff]  ;;  %v68_v17 = vld [vmem:[#allocation5 + $0x38] sm:$0xff]  ;;  %v409_v18 = vpack.c.bf16 %v158_v13, %v157_v12  ;;  %v159_v19 = vld [vmem:[#allocation7 + $0x20] sm:$0xff] }
  0x3b   :  { %384 = vmatprep.subr.bf16.mxu0 %v541_v0  ;;  %v160_v20 = vld [vmem:[#allocation7 + $0x28] sm:$0xff]  ;;  %v391_v21 = vpack.c.bf16 %v68_v17, %v67_v16  ;;  %v69_v22 = vld [vmem:[#allocation5 + $0x40] sm:$0xff]  ;;  %v161_v25 = vld [vmem:[#allocation7 + $0x30] sm:$0xff] }
  0x3c   :  { %407 = vmatpush3.bf16.msra.mxu1 %v406_v15  ;;  %v70_v23 = vld [vmem:[#allocation5 + $0x48] sm:$0xff]  ;;  %v412_v24 = vpack.c.bf16 %v160_v20, %v159_v19  ;;  %v162_v26 = vld [vmem:[#allocation7 + $0x38] sm:$0xff]  ;;  %v71_v28 = vld [vmem:[#allocation5 + $0x50] sm:$0xff] }
  0x3d   :  { %408 = vmatprep.subr.bf16.mxu1 %v541_v0  ;;  %v394_v27 = vpack.c.bf16 %v70_v23, %v69_v22  ;;  %v72_v29 = vld [vmem:[#allocation5 + $0x58] sm:$0xff]  ;;  %v415_v30 = vpack.c.bf16 %v162_v26, %v161_v25  ;;  %v163_v31 = vld [vmem:[#allocation7 + $0x40] sm:$0xff]  ;;  %v164_v32 = vld [vmem:[#allocation7 + $0x48] sm:$0xff] }
  0x3e   :  { %386 = vmatpush3.bf16.msra.mxu0 %v385_v7  ;;  %v397_v33 = vpack.c.bf16 %v72_v29, %v71_v28  ;;  %v73_v34 = vld [vmem:[#allocation5 + $0x60] sm:$0xff]  ;;  %v74_v35 = vld [vmem:[#allocation5 + $0x68] sm:$0xff]  ;;  %v418_v36 = vpack.c.bf16 %v164_v32, %v163_v31  ;;  %v165_v37 = vld [vmem:[#allocation7 + $0x50] sm:$0xff] }
  0x3f   :  { %387 = vmatprep.subr.bf16.mxu0 %v541_v0  ;;  %v166_v38 = vld [vmem:[#allocation7 + $0x58] sm:$0xff]  ;;  %v400_v39 = vpack.c.bf16 %v74_v35, %v73_v34  ;;  %v75_v40 = vld [vmem:[#allocation5 + $0x70] sm:$0xff]  ;;  %v167_v43 = vld [vmem:[#allocation7 + $0x60] sm:$0xff] }
  0x40   :  { %410 = vmatpush3.bf16.msra.mxu1 %v409_v18  ;;  %v76_v41 = vld [vmem:[#allocation5 + $0x78] sm:$0xff]  ;;  %v421_v42 = vpack.c.bf16 %v166_v38, %v165_v37  ;;  %v168_v44 = vld [vmem:[#allocation7 + $0x68] sm:$0xff]  ;;  %v169_v48 = vld [vmem:[#allocation7 + $0x70] sm:$0xff] }
  0x41   :  { %411 = vmatprep.subr.bf16.mxu1 %v541_v0  ;;  %v403_v45 = vpack.c.bf16 %v76_v41, %v75_v40  ;;  %v424_v46 = vpack.c.bf16 %v168_v44, %v167_v43  ;;  %v60_v47 = vld [vmem:[#allocation2] sm:$0xff] }
  0x42   :  { %389 = vmatpush3.bf16.msra.mxu0 %v388_v14  ;;  %v170_v49 = vld [vmem:[#allocation7 + $0x78] sm:$0xff] }
  0x43   :  { %390 = vmatprep.subr.bf16.mxu0 %v541_v0  ;;  %v427_v50 = vpack.c.bf16 %v170_v49, %v169_v48  ;;  %v275_v51 = vld [vmem:[%s653_s2] ss:$0 sm:$0xff]  ;;  %s544_s2 = smov [#allocation8]  }
  0x44   :  { %413 = vmatpush3.bf16.msra.mxu1 %v412_v24  ;;  %v276_v56 = vld [vmem:[%s655_s4] ss:$0 sm:$0xff]  ;;  %s265_s7 = sshll.u32 %s544_s2, 4  ;;  %s266_s7 = int_to_ptr.vmem [resolvable:$true] %s265_s7 }
  0x45   :  { %414 = vmatprep.subr.bf16.mxu1 %v541_v0  ;;  %s508_s4 = scalar_lea.vmem %s266_s7, 128  ;;  %p513_p11 = scmp.lt.s32.totalorder %s266_s7, %s266_s7 }
  0x46   :  { %392 = vmatpush3.bf16.msra.mxu0 %v391_v21  ;;  %p509_p10 = scmp.ne.s32.totalorder %s266_s7, %s508_s4  ;;  %p514_p12 = scmp.lt.s32.totalorder %s508_s4, %s508_s4 }
  0x47   :  { %393 = vmatprep.subr.bf16.mxu0 %v541_v0 }
  0x48   :  { %416 = vmatpush3.bf16.msra.mxu1 %v415_v30  ;;  %p515_p13 = por %p514_p12, %p513_p11 }
  0x49   :  { %417 = vmatprep.subr.bf16.mxu1 %v541_v0 }
  0x4a   :  { %395 = vmatpush3.bf16.msra.mxu0 %v394_v27  ;;  %p516_p0 = pnand %p515_p13, %p509_p10 }
  0x4b   :  { %396 = vmatprep.subr.bf16.mxu0 %v541_v0 }
  0x4c   :  { %419 = vmatpush3.bf16.msra.mxu1 %v418_v36 }
  0x4d   :  { %420 = vmatprep.subr.bf16.mxu1 %v541_v0 }
  0x4e   :  { %398 = vmatpush3.bf16.msra.mxu0 %v397_v33 }
  0x4f   :  { %399 = vmatprep.subr.bf16.mxu0 %v541_v0 }
  0x50   :  { %422 = vmatpush3.bf16.msra.mxu1 %v421_v42 }
  0x51   :  { %423 = vmatprep.subr.bf16.mxu1 %v541_v0 }
  0x52   :  { %401 = vmatpush3.bf16.msra.mxu0 %v400_v39 }
  0x53   :  { %402 = vmatprep.subr.bf16.mxu0 %v541_v0 }
  0x54   :  { %425 = vmatpush3.bf16.msra.mxu1 %v424_v46 }
  0x55   :  { %426 = vmatprep.subr.bf16.mxu1 %v541_v0 }
  0x56   :  { %404 = vmatpush3.bf16.msra.mxu0 %v403_v45 }
  0x58   :  { %428 = vmatpush3.bf16.msra.mxu1 %v427_v50 }
  0x59   :  { %344 = vmatmul.mubr.f32.vlgmr.msra.gmra.mrb[0].mxu0 %v60_v47 }
 0x12c   :  { %v150_v52 = vpop.f32.mrb[0].mxu0 }
 0x12d   :  { %v151_v53 = vadd.f32 %v275_v51, %v150_v52  ;;  %v345_v54 = vpop.f32.mrb[1].mxu0 }
 0x12f   :  { %v154_v55 = vmax.f32 %v151_v53, 0.0 }
 0x131   :  { %379 = vmatmul.mubr.f32.vlgmr.msra.gmra.mrb[0].mxu1 %v154_v55 }
 0x204   :  { %v244_v57 = vpop.f32.mrb[0].mxu1 }
 0x205   :  { %v245_v58 = vadd.f32 %v276_v56, %v244_v57  ;;  %v380_v59 = vpop.f32.mrb[1].mxu1 }
 0x207   :  { %248 = vmax.xlane.f32.xlu0 %v245_v58 }
 0x294   :  { %v249_v60 = vpop.xlane.xlu0 %248 }
 0x295   :  { %v250_v61 = vsub.f32 %v245_v58, %v249_v60 }
 0x297   :  { %v251_v62 = vmul.f32 1.442695, %v250_v61 }
 0x299   :  { %438 = vpow2.f32 %v251_v62 }
 0x2a3   :  { %v439_v63 = vpop.eup %438 }
 0x2a4   :  { %253 = vadd.xlane.f32.xlu0 %v439_v63 }
 0x331   :  { %v254_v0 = vpop.xlane.xlu0 %253 }
 0x332   :  { %440 = vlog2.f32 %v254_v0 }
 0x33c   :  { %v441_v1 = vpop.eup %440 }
 0x33d   :  { %v256_v2 = vmul.f32 0.6931472, %v441_v1 }
 0x33f   :  { %v257_v3 = vsub.f32 %v250_v61, %v256_v2 }
 0x341   :  { %258 = vst [vmem:[#allocation8] sm:$0xff] %v257_v3 }
 0x342   :  { %519 = shalt.err (!%p516_p0)
}
 0x343   :  { %s520_s10 = scalar_lea.hbm %s656_s5, 128 }
 0x344   :  { %p521_p1 = scmp.ne.s32.totalorder %s656_s5, %s520_s10  ;;  %p524_p2 = scmp.lt.u32.totalorder %s520_s10, %s656_s5 }
 0x346   :  { %p526_p3 = pnand %p524_p2, %p521_p1 }
 0x348   :  { %529 = shalt.err (!%p526_p3)
}
 0x349   :  { %268 = dma.vmem_to_hbm [thread:$0]  %s266_s7, 128, %s656_s5, [#allocation4]  }
 0x34a   :  { %534 = dma.done.wait [#allocation4], 128  }
 0x34b   :  { %535 = vsyncadd [#allocation4], 4294967168 }
 0x34c   :  { %272 = vsyncpa [#allocation3], 1 }
 0x34d   :  { %273 = vsyncpa [#allocation6], 1 }
 0x34e   :  { %274 = vsyncpa [#allocation4], 1 }

</bundles_post_ra>
